<compile_context>
chip_gen: v7x
topology: tpu7x:2x2x1
jax: 0.10.0
libtpu: 0.0.40
codegen_flags: <defaults>
</compile_context>

<pallas_src>
import functools

import jax
import jax.numpy as jnp
from jax.experimental import pallas as pl
from jax.experimental.pallas import tpu as pltpu


# Rows (lanes) per block: 128K rows of f32 -> 2 MiB input block + 2 MiB of
# output blocks; x2 for double-buffering = 8 MiB, well under every chip's
# scoped-VMEM default.  Must stay a multiple of 128.
_DEFAULT_BLOCK_ROWS = 128 * 1024


def _vmf_output_kernel(x_ref, mu_ref, kappa_ref, *, kappa_max):
    # x_ref:     (4, BN)  transposed, lane-dense block (features on sublanes)
    # mu_ref:    (3, BN)
    # kappa_ref: (1, BN)
    x = x_ref[...].astype(jnp.float32)

    l0 = x[0:1, :]
    l1 = x[1:2, :]
    l2 = x[2:3, :]
    kraw = x[3:4, :]

    # torch.nn.functional.normalize(loc, dim=-1): v / max(||v||, 1e-12)
    #   == v * rsqrt(max(||v||^2, 1e-24))   (sqrt is monotone)
    sq = l0 * l0 + l1 * l1 + l2 * l2              # (1, BN), pure VPU — no XLU reduce
    inv = jax.lax.rsqrt(jnp.maximum(sq, 1e-24))   # EUP slot (otherwise idle)
    mu_ref[...] = (x[0:3, :] * inv).astype(mu_ref.dtype)

    # kappa = clamp(exp(kappa), 0, 4 * kappa_0)
    kappa_ref[...] = jnp.clip(jnp.exp(kraw), 0.0, kappa_max).astype(kappa_ref.dtype)


def vmf_output_forward(x, kappa_0=25, *, block_rows=_DEFAULT_BLOCK_ROWS):
    """Pallas implementation of VMFOutput.forward.

    Args:
      x: array of shape (..., 4).
      kappa_0: clamp parameter (clamp max is 4 * kappa_0).
      block_rows: rows per grid block (multiple of 128; tune for VMEM budget).

    Returns:
      (mu, kappa): mu has shape (..., 3), kappa has shape (..., 1).
    """
    assert x.shape[-1] == 4, "The last dimension of the input tensor must be 4."
    lead = x.shape[:-1]
    n = 1
    for d in lead:
        n *= d

    # Fused, lane-dense (4, N) view: one XLA transpose, then the kernel reads x
    # exactly once with full 128-lane vector loads/stores.
    xt = x.reshape(n, 4).T

    bn = n if n <= block_rows else block_rows     # tiled blocks are 128-aligned
    grid = (pl.cdiv(n, bn),)
    kappa_max = float(4 * kappa_0)

    mu_t, kappa_t = pl.pallas_call(
        functools.partial(_vmf_output_kernel, kappa_max=kappa_max),
        grid=grid,
        in_specs=[pl.BlockSpec((4, bn), lambda i: (0, i))],
        out_specs=(
            pl.BlockSpec((3, bn), lambda i: (0, i)),
            pl.BlockSpec((1, bn), lambda i: (0, i)),
        ),
        out_shape=(
            jax.ShapeDtypeStruct((3, n), x.dtype),
            jax.ShapeDtypeStruct((1, n), x.dtype),
        ),
        compiler_params=pltpu.CompilerParams(
            dimension_semantics=("parallel",)),
    )(xt)

    mu = mu_t.T.reshape(*lead, 3)
    kappa = kappa_t.reshape(*lead, 1)   # (1, N) row-major == (N,): free reshape
    return mu, kappa


class VMFOutputPallas:
    """Mirror of the PyTorch VMFOutput module (forward only)."""

    def __init__(self, prior=None):
        # Prior parameters (deterministic init, mirrors VMFPrior.__init__).
        # Not used in forward(); kept for completeness.
        md = jnp.asarray([0.0, 0.0, 1.0] if prior is None else prior,
                         dtype=jnp.float32)
        self.prior_mean_direction = md / jnp.maximum(
            jnp.linalg.norm(md, axis=-1, keepdims=True), 1e-12)
        self.prior_concentration = jnp.asarray(1.0, dtype=jnp.float32)

    def forward(self, x, kappa_0=25):
        mu, kappa = vmf_output_forward(x, kappa_0=kappa_0)
        # TODO(synk): VMFLikelihood is returned as the (mu, kappa) pair; its
        # methods (entropy/NLL/etc.) are not part of this forward pass.
        return mu, kappa


def _reference_forward(x, kappa_0=25):
    loc = x[..., :3]
    mu = loc / jnp.maximum(jnp.linalg.norm(loc, axis=-1, keepdims=True), 1e-12)
    kappa = jnp.clip(jnp.exp(x[..., 3]), 0.0, 4.0 * kappa_0)[..., None]
    return mu, kappa


if __name__ == "__main__":
    key = jax.random.PRNGKey(0)
    # Small shapes consistent with the module: batch=2, seq=8, feature=4.
    x = jax.random.normal(key, (2, 8, 4), dtype=jnp.float32)

    module = VMFOutputPallas()
    mu, kappa = module.forward(x, kappa_0=25)
    jax.block_until_ready((mu, kappa))

    mu_ref, kappa_ref = _reference_forward(x, kappa_0=25)
    assert mu.shape == (2, 8, 3) and kappa.shape == (2, 8, 1)
    assert jnp.allclose(mu, mu_ref, atol=1e-5, rtol=1e-5)
    assert jnp.allclose(kappa, kappa_ref, atol=1e-5, rtol=1e-5)

    # Also exercise the tiled + partial-last-block path with a forced small block.
    x2 = jax.random.normal(jax.random.PRNGKey(1), (2, 200, 4), dtype=jnp.float32)
    mu2, kappa2 = vmf_output_forward(x2, kappa_0=25, block_rows=128)
    jax.block_until_ready((mu2, kappa2))
    mu2_ref, kappa2_ref = _reference_forward(x2, kappa_0=25)
    assert mu2.shape == (2, 200, 3) and kappa2.shape == (2, 200, 1)
    assert jnp.allclose(mu2, mu2_ref, atol=1e-5, rtol=1e-5)
    assert jnp.allclose(kappa2, kappa2_ref, atol=1e-5, rtol=1e-5)

    print("KERNEL_OK")
</pallas_src>

<mosaic_0001>
module attributes {stable_mosaic.version = 11 : i64} {
  func.func @_vmf_output_kernel(%arg0: i32, %arg1: memref<4x16xf32, #tpu.memory_space<vmem>>, %arg2: memref<3x16xf32, #tpu.memory_space<vmem>>, %arg3: memref<1x16xf32, #tpu.memory_space<vmem>>) attributes {dimension_semantics = [#tpu.dimension_semantics<parallel>], iteration_bounds = array<i64: 1>, scalar_prefetch = 0 : i64, scratch_operands = 0 : i64, tpu.core_type = #tpu.core_type<tc>, window_params = [{transform_indices = @transform_0, window_bounds = array<i64: 4, 16>}, {transform_indices = @transform_1, window_bounds = array<i64: 3, 16>}, {transform_indices = @transform_2, window_bounds = array<i64: 1, 16>}]} {
    %c0 = arith.constant 0 : index
    %c0_0 = arith.constant 0 : index
    %0 = vector.load %arg1[%c0, %c0_0] : memref<4x16xf32, #tpu.memory_space<vmem>>, vector<4x16xf32>
    %1 = vector.extract_strided_slice %0 {offsets = [0, 0], sizes = [1, 16], strides = [1, 1]} : vector<4x16xf32> to vector<1x16xf32>
    %2 = vector.extract_strided_slice %0 {offsets = [1, 0], sizes = [1, 16], strides = [1, 1]} : vector<4x16xf32> to vector<1x16xf32>
    %3 = vector.extract_strided_slice %0 {offsets = [2, 0], sizes = [1, 16], strides = [1, 1]} : vector<4x16xf32> to vector<1x16xf32>
    %4 = vector.extract_strided_slice %0 {offsets = [3, 0], sizes = [1, 16], strides = [1, 1]} : vector<4x16xf32> to vector<1x16xf32>
    %5 = arith.mulf %1, %1 : vector<1x16xf32>
    %6 = arith.mulf %2, %2 : vector<1x16xf32>
    %7 = arith.addf %5, %6 : vector<1x16xf32>
    %8 = arith.mulf %3, %3 : vector<1x16xf32>
    %9 = arith.addf %7, %8 : vector<1x16xf32>
    %cst = arith.constant 1.000000e-24 : f32
    %10 = vector.broadcast %cst : f32 to vector<1x16xf32>
    %11 = arith.maximumf %9, %10 : vector<1x16xf32>
    %12 = math.rsqrt %11 : vector<1x16xf32>
    %13 = vector.extract_strided_slice %0 {offsets = [0, 0], sizes = [3, 16], strides = [1, 1]} : vector<4x16xf32> to vector<3x16xf32>
    %14 = vector.broadcast %12 : vector<1x16xf32> to vector<3x16xf32>
    %15 = arith.mulf %13, %14 : vector<3x16xf32>
    %c0_1 = arith.constant 0 : index
    %c0_2 = arith.constant 0 : index
    %16 = vector.load %arg2[%c0_1, %c0_2] : memref<3x16xf32, #tpu.memory_space<vmem>>, vector<3x16xf32>
    tpu.vector_store %arg2[%c0_1, %c0_2], %15 {strides = array<i32>} : memref<3x16xf32, #tpu.memory_space<vmem>>, vector<3x16xf32>,
    %17 = math.exp %4 : vector<1x16xf32>
    %cst_3 = arith.constant 0.000000e+00 : f32
    %cst_4 = arith.constant 1.000000e+02 : f32
    %18 = vector.broadcast %cst_3 : f32 to vector<1x16xf32>
    %19 = arith.maximumf %18, %17 : vector<1x16xf32>
    %20 = vector.broadcast %cst_4 : f32 to vector<1x16xf32>
    %21 = arith.minimumf %20, %19 : vector<1x16xf32>
    %c0_5 = arith.constant 0 : index
    %c0_6 = arith.constant 0 : index
    %22 = vector.load %arg3[%c0_5, %c0_6] : memref<1x16xf32, #tpu.memory_space<vmem>>, vector<1x16xf32>
    tpu.vector_store %arg3[%c0_5, %c0_6], %21 {strides = array<i32>} : memref<1x16xf32, #tpu.memory_space<vmem>>, vector<1x16xf32>,
    return
  }
  func.func @transform_0(%arg0: i32) -> (i32, i32) {
    %c0_i32 = arith.constant 0 : i32
    %c0_i32_0 = arith.constant 0 : i32
    return %c0_i32, %arg0 : i32, i32
  }
  func.func @transform_1(%arg0: i32) -> (i32, i32) {
    %c0_i32 = arith.constant 0 : i32
    %c0_i32_0 = arith.constant 0 : i32
    return %c0_i32, %arg0 : i32, i32
  }
  func.func @transform_2(%arg0: i32) -> (i32, i32) {
    %c0_i32 = arith.constant 0 : i32
    %c0_i32_0 = arith.constant 0 : i32
    return %c0_i32, %arg0 : i32, i32
  }
}

</mosaic_0001>

<bundles_post_ra>
// kernel: tpu_custom_call.1
= control target key start
LH: loop header
LB: loop body
LE: loop exit
PB: predicated region body
PF: predicated region fallthrough
CT: control target
= control target key end

     0   :  { %8 = vsyncpa [#allocation3], 0  ;;  %s210_s0 = inlined_call_operand.hbm [shape: f32[4,16], index: 0, kind: input, shape index: {}]   ;;  %s211_s1 = inlined_call_operand.hbm [shape: f32[3,16], index: 1, kind: output, shape index: {0}]   ;;  %s212_s2 = inlined_call_operand.hbm [shape: f32[1,16], index: 2, kind: output, shape index: {1}]  }
   0x1   :  { %9 = vsyncpa [#allocation4], 0 }
   0x2   :  { %10 = vsyncpa [#allocation7], 0  ;;  %s156_s9 = smov [#allocation2]   ;;  %s84_s13 = scalar_lea.hbm %s210_s0, 64 }
   0x3   :  { %s17_s10 = sshll.u32 %s156_s9, 4  ;;  %p85_p0 = scmp.ne.s32.totalorder %s210_s0, %s84_s13  ;;  %s18_s10 = int_to_ptr.vmem [resolvable:$true] %s17_s10 }
   0x4   :  { %p88_p1 = scmp.lt.u32.totalorder %s84_s13, %s210_s0 }
   0x6   :  { %p90_p2 = pnand %p88_p1, %p85_p0 }
   0x8   :  { %93 = shalt.err (!%p90_p2)
}
   0x9   :  { %s94_s18 = scalar_lea.vmem %s18_s10, 64  ;;  %p99_p4 = scmp.lt.s32.totalorder %s18_s10, %s18_s10 }
   0xa   :  { %p95_p3 = scmp.ne.s32.totalorder %s18_s10, %s94_s18  ;;  %p100_p5 = scmp.lt.s32.totalorder %s94_s18, %s94_s18 }
   0xc   :  { %p101_p6 = por %p100_p5, %p99_p4 }
   0xe   :  { %p102_p7 = pnand %p101_p6, %p95_p3 }
  0x10   :  { %105 = shalt.err (!%p102_p7)
}
  0x11   :  { %20 = dma.hbm_to_vmem [thread:$0]  %s210_s0, 64, %s18_s10, [#allocation3]  }
  0x12   :  { %150 = dma.done.wait [#allocation3], 64  }
  0x13   :  { %151 = vsyncadd [#allocation3], 4294967232  ;;  %v24_v0 = vld [vmem:[#allocation2] sm:$0xf]  ;;  %v35_v8 = vlaneseq  ;;  %s157_s21 = smov [#allocation6]   ;;  %vm46_vm0 = vcmask 125955  }
  0x14   :  { %v25_v1 = vmul.f32 %v24_v0, %v24_v0  ;;  %v42_v2 = vmul.f32 1.442695, %v24_v0  ;;  %s64_s22 = sshll.u32 %s157_s21, 4  ;;  %s65_s22 = int_to_ptr.vmem [resolvable:$true] %s64_s22 }
  0x15   :  { %v36_v10 = vshrl.u32 %v35_v8, 7  ;;  %s106_s0 = scalar_lea.vmem %s65_s22, 16  ;;  %s110_s23 = scalar_lea.vmem %s65_s22, 32 }
  0x16   :  { %v27_v3 = vrot.slane %v25_v1, 1  ;;  %v30_v4 = vrot.slane %v25_v1, 2  ;;  %80 = vpow2.f32 %v42_v2  ;;  %p107_p8 = scmp.ne.s32.totalorder %s65_s22, %s106_s0  ;;  %p111_p9 = scmp.lt.s32.totalorder %s65_s22, %s65_s22 }
  0x17   :  { %v37_v13 = vsub.s32 0, %v36_v10  ;;  %p112_p10 = scmp.lt.s32.totalorder %s110_s23, %s106_s0 }
  0x18   :  { %v29_v5 = vadd.f32 %v27_v3, %v25_v1 }
  0x19   :  { %p113_p11 = por %p112_p10, %p111_p9 }
  0x1a   :  { %v32_v6 = vadd.f32 %v30_v4, %v29_v5 }
  0x1b   :  { %p114_p12 = pnand %p113_p11, %p107_p8 }
  0x1c   :  { %v33_v7 = vmax.f32 %v32_v6, 1e-24 }
  0x1e   :  { %82 = vrsqrt.f32 %v33_v7 }
  0x20   :  { %v81_v9 = vpop.eup %80 }
  0x21   :  { %v44_v11 = vmax.f32 %v81_v9, 0.0 }
  0x23   :  { %v45_v12 = vmin.f32 %v44_v11, 100.0 }
  0x25   :  { %47 = vst.msk [vmem:[#allocation6 - $0x3] sm:$0x8] %vm46_vm0, %v45_v12 }
  0x26   :  { %117 = shalt.err (!%p114_p12)
}
  0x27   :  { %s118_s26 = scalar_lea.hbm %s212_s2, 16 }
  0x28   :  { %p119_p13 = scmp.ne.s32.totalorder %s212_s2, %s118_s26  ;;  %p122_p0 = scmp.lt.u32.totalorder %s118_s26, %s212_s2 }
  0x2a   :  { %p124_p1 = pnand %p122_p0, %p119_p13 }
  0x2c   :  { %127 = shalt.err (!%p124_p1)
}
  0x2d   :  { %67 = dma.vmem_to_hbm [thread:$0]  %s65_s22, 16, %s212_s2, [#allocation7]   ;;  %v83_v14 = vpop.eup %82  ;;  %vm40_vm1 = vcmask 124928  }
  0x2e   :  { %s158_s5 = smov [#allocation5]   ;;  %v38_v15 = vrot.slane %v83_v14, %v37_v13 }
  0x2f   :  { %s54_s6 = sshll.u32 %s158_s5, 4  ;;  %s55_s6 = int_to_ptr.vmem [resolvable:$true] %s54_s6 }
  0x30   :  { %v39_v16 = vmul.f32 %v38_v15, %v24_v0  ;;  %s128_s7 = scalar_lea.vmem %s55_s6, 64  ;;  %p133_p3 = scmp.lt.s32.totalorder %s55_s6, %s55_s6 }
  0x31   :  { %p129_p2 = scmp.ne.s32.totalorder %s55_s6, %s128_s7  ;;  %p134_p4 = scmp.lt.s32.totalorder %s128_s7, %s128_s7 }
  0x32   :  { %41 = vst.msk [vmem:[#allocation5] sm:$0x7] %vm40_vm1, %v39_v16 }
  0x33   :  { %p135_p5 = por %p134_p4, %p133_p3 }
  0x35   :  { %p136_p6 = pnand %p135_p5, %p129_p2 }
  0x37   :  { %139 = shalt.err (!%p136_p6)
}
  0x38   :  { %s140_s10 = scalar_lea.hbm %s211_s1, 64 }
  0x39   :  { %p141_p7 = scmp.ne.s32.totalorder %s211_s1, %s140_s10  ;;  %p144_p8 = scmp.lt.u32.totalorder %s140_s10, %s211_s1 }
  0x3b   :  { %p146_p9 = pnand %p144_p8, %p141_p7 }
  0x3d   :  { %149 = shalt.err (!%p146_p9)
}
  0x3e   :  { %57 = dma.vmem_to_hbm [thread:$0]  %s55_s6, 64, %s211_s1, [#allocation4]  }
  0x3f   :  { %152 = dma.done.wait [#allocation4], 64  }
  0x40   :  { %153 = vsyncadd [#allocation4], 4294967232 }
  0x41   :  { %154 = dma.done.wait [#allocation7], 16  }
  0x42   :  { %155 = vsyncadd [#allocation7], 4294967280 }
  0x43   :  { %74 = vsyncpa [#allocation3], 1 }
  0x44   :  { %75 = vsyncpa [#allocation4], 1 }
  0x45   :  { %76 = vsyncpa [#allocation7], 1 }

</bundles_post_ra>
